<compile_context>
chip_gen: v7x
topology: tpu7x:2x2x1
jax: 0.10.0
libtpu: 0.0.40
codegen_flags: <defaults>
</compile_context>

<pallas_src>
import functools
import math

import numpy as np

import jax
import jax.numpy as jnp
from jax.experimental import pallas as pl
from jax.experimental.pallas import tpu as pltpu


def _cnre_kernel(prev_ref, cur_ref, next_ref, w1a_ref, w1b_ref, b1_ref,
                 w2_ref, shift_ref, out_ref, *, K, Dp, split_l1):
    """One lane-tile of the batch axis N.

    Layout (features on sublanes, batch on lanes):
      prev_ref : (Dp, halo)     theta^T columns cyclically *before* this tile
      cur_ref  : (Dp+Lp, tn)    [theta^T ; x^T] columns of this tile
      next_ref : (Dp, halo)     theta^T columns cyclically *after* this tile
    """
    f32 = jnp.float32
    tn = cur_ref.shape[-1]
    halo = prev_ref.shape[-1]

    cur = cur_ref[...]
    theta_cur = cur[:Dp, :]                                     # (Dp, tn)
    x_cols = cur[Dp:, :]                                        # (Lp, tn)
    theta_wide = jnp.concatenate(
        [prev_ref[...], theta_cur, next_ref[...]], axis=1)      # (Dp, halo+tn+halo)

    w1a = w1a_ref[...]                                          # (H, Dp)  stream dtype
    w1b = w1b_ref[...]                                          # (H, Lp)  stream dtype
    b1 = b1_ref[...]                                            # (H, 1)   f32
    w2p = w2_ref[...]                                           # (8, H)   f32, rows 1..7 zero
    shift = shift_ref[0, 0]                                     # log(gamma/K) + b2

    # x-branch of layer 1, shared by every contrastive offset (computed once).
    xb = jnp.dot(w1b, x_cols, preferred_element_type=f32) + b1  # (H, tn)

    def layer2(h):
        # (8, H) @ (H, tn) on the MXU; only row 0 of w2p is real.
        return jnp.dot(w2p, h, preferred_element_type=f32)[0:1, :]   # (1, tn)

    if split_l1:
        # H > Dp: lane-shift the *raw* theta window (cheap at Dp sublanes) and
        # run one small MXU matmul per offset.
        def logit(off):
            t_cols = theta_wide[:, halo + off:halo + off + tn]        # (Dp, tn)
            h = jnp.maximum(
                jnp.dot(w1a, t_cols, preferred_element_type=f32) + xb, 0.0)
            return layer2(h)
    else:
        # H <= Dp: project the window once, shift the projected rows.
        t_wide = jnp.dot(w1a, theta_wide, preferred_element_type=f32)
        def logit(off):
            h = jnp.maximum(t_wide[:, halo + off:halo + off + tn] + xb, 0.0)
            return layer2(h)

    def logsumexp(offsets):
        ls = [logit(o) for o in offsets]
        m = ls[0]
        for p in ls[1:]:
            m = jnp.maximum(m, p)
        s = jnp.exp(ls[0] - m)
        for p in ls[1:]:
            s = s + jnp.exp(p - m)
        return m + jnp.log(s) + shift

    log_r = logsumexp(list(range(K)))            # joint pairs (theta_{i+k}, x_i)
    log_r_prime = logsumexp(list(range(-K, 0)))  # marginal pairs (theta_{i+k-K}, x_i)

    def softplus(z):   # softplus(z) == -logsigmoid(-z), numerically stable
        return jnp.maximum(z, 0.0) + jnp.log1p(jnp.exp(-jnp.abs(z)))

    # Per-tile partial sums (lane reduce rides the XLU); final mean in JAX.
    js = jnp.sum(softplus(-log_r), axis=-1, keepdims=True)       # (1, 1)
    ms = jnp.sum(softplus(log_r_prime), axis=-1, keepdims=True)  # (1, 1)
    out_ref[...] = jnp.concatenate([js, ms], axis=-1).reshape(1, 1, 2)


def _row_pad(n, dtype):
    """Sublane padding multiple: 8 rows for 32-bit, 16 rows for 16-bit dtypes."""
    mult = 8 * (4 // jnp.dtype(dtype).itemsize)
    return -(-n // mult) * mult


def _pick_tile_n(N, max_tile=2048):
    """Lane-tile width: a multiple of 128 dividing N, as large as possible but
    leaving at least two tiles so v7x's two TensorCores both get work."""
    if N % 128 != 0 or N < 256:
        return N                                     # single full tile
    cap = min(max_tile, (N // 2) // 128 * 128)       # >= 2 parallel tiles
    for t in range(cap, 127, -128):
        if N % t == 0:
            return t
    return N


def pack_inputs(theta, x, dtype=jnp.float32):
    """(N, D)/(N, L) row-major -> (Dp+Lp, N) feature-major packed stream."""
    N, D = theta.shape
    _, L = x.shape
    Dp = _row_pad(D, dtype)
    Lp = _row_pad(L, dtype)
    return jnp.concatenate([
        jnp.pad(theta.T, ((0, Dp - D), (0, 0))),
        jnp.pad(x.T, ((0, Lp - L), (0, 0))),
    ], axis=0).astype(dtype)


def cnre_loss_packed(tx, params, *, D, L, cardinality=2, gamma=1.0, tile_n=None):
    """CNRE loss from a feature-major packed input (theta^T rows then x^T rows)."""
    rows, N = tx.shape
    Dp = _row_pad(D, tx.dtype)
    Lp = rows - Dp
    assert Lp == _row_pad(L, tx.dtype), (rows, Dp, Lp)

    K = int(cardinality)
    assert N >= 2 * K, "CNRE requires N >= 2K"

    w1, b1, w2, b2 = params
    H = w1.shape[1]
    assert w1.shape == (D + L, H)

    # --- tile selection ------------------------------------------------------
    if tile_n is None:
        tn = _pick_tile_n(N) if K <= 128 else N      # halo covers <= 128 lanes
    else:
        tn = int(tile_n)
        if N % tn != 0:
            raise ValueError(f"tile_n={tn} must divide N={N}")
        if tn != N and (tn % 128 != 0 or N % 128 != 0):
            raise ValueError("multi-tile requires tile_n and N to be multiples of 128")
        if tn != N and K > 128:
            raise ValueError("multi-tile halo supports K <= 128 only")
    num_tiles = N // tn
    multi = num_tiles > 1
    if multi:
        assert K <= 128

    # --- weights (layer-1 split theta/x; b2 folded into the logsumexp shift) --
    w1a = jnp.pad(w1[:D].T, ((0, 0), (0, Dp - D))).astype(tx.dtype)   # (H, Dp)
    w1b = jnp.pad(w1[D:].T, ((0, 0), (0, Lp - L))).astype(tx.dtype)   # (H, Lp)
    b1c = jnp.reshape(b1, (H, 1)).astype(jnp.float32)
    w2p = jnp.pad(jnp.reshape(w2, (1, H)),
                  ((0, 7), (0, 0))).astype(jnp.float32)               # (8, H)
    shift = (jnp.float32(math.log(gamma / K))
             + jnp.reshape(b2, ()).astype(jnp.float32)).reshape(1, 1)

    # --- block specs -----------------------------------------------------------
    cur_spec = pl.BlockSpec((Dp + Lp, tn), lambda i: (0, i))
    if multi:
        bpt, nblk = tn // 128, N // 128              # 128-lane cyclic halo blocks
        prev_spec = pl.BlockSpec((Dp, 128),
                                 lambda i: (0, (i * bpt + nblk - 1) % nblk))
        next_spec = pl.BlockSpec((Dp, 128),
                                 lambda i: (0, ((i + 1) * bpt) % nblk))
    else:
        prev_spec = pl.BlockSpec((Dp, tn), lambda i: (0, 0))
        next_spec = pl.BlockSpec((Dp, tn), lambda i: (0, 0))
    full = lambda i: (0, 0)

    kernel = functools.partial(_cnre_kernel, K=K, Dp=Dp, split_l1=H > Dp)

    partials = pl.pallas_call(
        kernel,
        out_shape=jax.ShapeDtypeStruct((num_tiles, 1, 2), jnp.float32),
        grid=(num_tiles,),
        in_specs=[
            prev_spec,                                   # theta^T halo (before)
            cur_spec,                                    # [theta^T ; x^T] tile
            next_spec,                                   # theta^T halo (after)
            pl.BlockSpec((H, Dp), full),                 # W1[:D]^T  (resident)
            pl.BlockSpec((H, Lp), full),                 # W1[D:]^T  (resident)
            pl.BlockSpec((H, 1), full),                  # b1
            pl.BlockSpec((8, H), full),                  # w2^T (zero-padded to 8 rows)
            pl.BlockSpec(memory_space=pltpu.MemorySpace.SMEM),   # shift (+b2)
        ],
        out_specs=pl.BlockSpec((1, 1, 2), lambda i: (i, 0, 0)),
        compiler_params=pltpu.CompilerParams(
            dimension_semantics=("parallel",)),
    )(tx, tx, tx, w1a, w1b, b1c, w2p, shift)

    l1 = jnp.sum(partials[:, 0, 0]) / N      # mean_n -logsigmoid(log_r)
    l0 = jnp.sum(partials[:, 0, 1]) / N      # mean_n -logsigmoid(-log_r')
    return (gamma * l1 + l0) / (gamma + 1.0)


def cnre_loss(theta, x, params, *, cardinality=2, gamma=1.0, tile_n=None,
              input_dtype=jnp.float32):
    """CNRE loss with an in-script 2-layer MLP log-ratio estimator.

    theta: (N, D), x: (N, L).  Use input_dtype=jnp.bfloat16 to halve streaming
    bytes (recommended on v5e); all in-kernel accumulation stays float32.
    """
    N, D = theta.shape
    Nx, L = x.shape
    assert Nx == N
    # TODO(synk): callers that already hold feature-major data should call
    # cnre_loss_packed directly and skip this transpose+pad HBM round-trip.
    tx = pack_inputs(theta, x, input_dtype)
    return cnre_loss_packed(tx, params, D=D, L=L, cardinality=cardinality,
                            gamma=gamma, tile_n=tile_n)


def cnre_loss_ref(theta, x, params, *, cardinality=2, gamma=1.0):
    """Pure-JAX reference mirroring the PyTorch module exactly."""
    N, D = theta.shape
    _, L = x.shape
    K = cardinality
    w1, b1, w2, b2 = params
    idx = (jnp.arange(N)[None, :] + jnp.arange(K)[:, None]) % N   # (K, N)
    Theta = theta[idx]                                            # (K, N, D)
    Theta_prime = theta[(idx - K) % N]                            # (K, N, D)
    stacked = jnp.stack([Theta, Theta_prime], axis=0)             # (2, K, N, D)
    x_b = jnp.broadcast_to(x[None, None], (2, K, N, L))
    feats = jnp.concatenate([stacked, x_b], axis=-1).reshape(2 * K * N, D + L)
    h = jnp.maximum(feats @ w1 + b1, 0.0)
    logits = (h @ w2 + b2).reshape(2, K, N)
    shift = math.log(gamma / K)
    log_r = jax.scipy.special.logsumexp(logits[0], axis=0) + shift
    log_r_prime = jax.scipy.special.logsumexp(logits[1], axis=0) + shift
    l1 = -jnp.mean(jax.nn.log_sigmoid(log_r))
    l0 = -jnp.mean(jax.nn.log_sigmoid(-log_r_prime))
    return (gamma * l1 + l0) / (gamma + 1.0)


if __name__ == "__main__":
    key = jax.random.PRNGKey(0)
    kt, kx, k1, k2, k3, k4 = jax.random.split(key, 6)

    D, L, H = 4, 8, 32
    # Deterministic synthetic estimator parameters: MLP (D+L) -> H -> 1.
    w1 = jax.random.normal(k1, (D + L, H), jnp.float32) / math.sqrt(D + L)
    b1 = jax.random.normal(k2, (H,), jnp.float32) * 0.1
    w2 = jax.random.normal(k3, (H, 1), jnp.float32) / math.sqrt(H)
    b2 = jax.random.normal(k4, (1,), jnp.float32) * 0.1
    params = (w1, b1, w2, b2)

    theta_small = jax.random.normal(kt, (8, D), jnp.float32)
    x_small = jax.random.normal(kx, (8, L), jnp.float32)
    theta_256 = jax.random.normal(kt, (256, D), jnp.float32)
    x_256 = jax.random.normal(kx, (256, L), jnp.float32)
    theta_512 = jax.random.normal(kt, (512, D), jnp.float32)
    x_512 = jax.random.normal(kx, (512, L), jnp.float32)

    cases = [
        (theta_small, x_small, dict(cardinality=2, gamma=1.0)),          # single tile, N < 128
        (theta_256, x_256, dict(cardinality=2, gamma=1.0)),              # auto: 2 x 128, halo wrap
        (theta_256, x_256, dict(cardinality=3, gamma=2.0, tile_n=128)),  # larger K, gamma != 1
        (theta_512, x_512, dict(cardinality=4, gamma=0.5)),              # auto: 2 x 256 (bpt=2)
    ]
    for th, xx, kw in cases:
        loss = cnre_loss(th, xx, params, **kw)
        jax.block_until_ready(loss)
        ref = cnre_loss_ref(th, xx, params,
                            cardinality=kw["cardinality"], gamma=kw["gamma"])
        assert np.allclose(np.asarray(loss), np.asarray(ref), atol=1e-5, rtol=1e-4), \
            (kw, float(loss), float(ref))

    # bf16-streamed inputs + bf16 layer-1 weights (accumulation stays f32);
    # compare against the reference on identically bf16-rounded data.
    rd = lambda a: a.astype(jnp.bfloat16).astype(jnp.float32)
    loss_bf = cnre_loss(theta_256, x_256, params, cardinality=2, gamma=1.0,
                        input_dtype=jnp.bfloat16)
    jax.block_until_ready(loss_bf)
    ref_bf = cnre_loss_ref(rd(theta_256), rd(x_256), (rd(w1), b1, w2, b2),
                           cardinality=2, gamma=1.0)
    assert np.allclose(np.asarray(loss_bf), np.asarray(ref_bf), atol=1e-4, rtol=1e-3), \
        (float(loss_bf), float(ref_bf))

    print("KERNEL_OK")
</pallas_src>

<mosaic_0001>
module attributes {stable_mosaic.version = 11 : i64} {
  func.func @_cnre_kernel(%arg0: i32, %arg1: memref<8x8xf32, #tpu.memory_space<vmem>>, %arg2: memref<16x8xf32, #tpu.memory_space<vmem>>, %arg3: memref<8x8xf32, #tpu.memory_space<vmem>>, %arg4: memref<32x8xf32, #tpu.memory_space<vmem>>, %arg5: memref<32x8xf32, #tpu.memory_space<vmem>>, %arg6: memref<32x1xf32, #tpu.memory_space<vmem>>, %arg7: memref<8x32xf32, #tpu.memory_space<vmem>>, %arg8: memref<1x1xf32, #tpu.memory_space<smem>>, %arg9: memref<1x1x2xf32, #tpu.memory_space<vmem>>) attributes {dimension_semantics = [#tpu.dimension_semantics<parallel>], iteration_bounds = array<i64: 1>, scalar_prefetch = 0 : i64, scratch_operands = 0 : i64, tpu.core_type = #tpu.core_type<tc>, window_params = [{transform_indices = @transform_0, window_bounds = array<i64: 8, 8>}, {transform_indices = @transform_1, window_bounds = array<i64: 16, 8>}, {transform_indices = @transform_2, window_bounds = array<i64: 8, 8>}, {pipeline_mode = #tpu.pipeline_mode<synchronous>, transform_indices = @transform_3, window_bounds = array<i64: 32, 8>}, {pipeline_mode = #tpu.pipeline_mode<synchronous>, transform_indices = @transform_4, window_bounds = array<i64: 32, 8>}, {pipeline_mode = #tpu.pipeline_mode<synchronous>, transform_indices = @transform_5, window_bounds = array<i64: 32, 1>}, {pipeline_mode = #tpu.pipeline_mode<synchronous>, transform_indices = @transform_6, window_bounds = array<i64: 8, 32>}, {transform_indices = @transform_7, window_bounds = array<i64: 1, 1>}, {transform_indices = @transform_8, window_bounds = array<i64: 1, 1, 2>}]} {
    %c0 = arith.constant 0 : index
    %c0_0 = arith.constant 0 : index
    %0 = vector.load %arg2[%c0, %c0_0] : memref<16x8xf32, #tpu.memory_space<vmem>>, vector<16x8xf32>
    %1 = vector.extract_strided_slice %0 {offsets = [0, 0], sizes = [8, 8], strides = [1, 1]} : vector<16x8xf32> to vector<8x8xf32>
    %2 = vector.extract_strided_slice %0 {offsets = [8, 0], sizes = [8, 8], strides = [1, 1]} : vector<16x8xf32> to vector<8x8xf32>
    %c0_1 = arith.constant 0 : index
    %c0_2 = arith.constant 0 : index
    %3 = vector.load %arg1[%c0_1, %c0_2] : memref<8x8xf32, #tpu.memory_space<vmem>>, vector<8x8xf32>
    %c0_3 = arith.constant 0 : index
    %c0_4 = arith.constant 0 : index
    %4 = vector.load %arg3[%c0_3, %c0_4] : memref<8x8xf32, #tpu.memory_space<vmem>>, vector<8x8xf32>
    %5 = tpu.concatenate %3, %1, %4 in 1 : vector<8x8xf32>, vector<8x8xf32>, vector<8x8xf32> -> vector<8x24xf32>
    %c0_5 = arith.constant 0 : index
    %c0_6 = arith.constant 0 : index
    %6 = vector.load %arg4[%c0_5, %c0_6] : memref<32x8xf32, #tpu.memory_space<vmem>>, vector<32x8xf32>
    %c0_7 = arith.constant 0 : index
    %c0_8 = arith.constant 0 : index
    %7 = vector.load %arg5[%c0_7, %c0_8] : memref<32x8xf32, #tpu.memory_space<vmem>>, vector<32x8xf32>
    %c0_9 = arith.constant 0 : index
    %c0_10 = arith.constant 0 : index
    %8 = vector.load %arg6[%c0_9, %c0_10] : memref<32x1xf32, #tpu.memory_space<vmem>>, vector<32x1xf32>
    %c0_11 = arith.constant 0 : index
    %c0_12 = arith.constant 0 : index
    %9 = vector.load %arg7[%c0_11, %c0_12] : memref<8x32xf32, #tpu.memory_space<vmem>>, vector<8x32xf32>
    %c0_13 = arith.constant 0 : index
    %c0_14 = arith.constant 0 : index
    %10 = memref.load %arg8[%c0_13, %c0_14] : memref<1x1xf32, #tpu.memory_space<smem>>
    %cst = arith.constant dense<0.000000e+00> : vector<32x8xf32>
    %11 = tpu.matmul %7, %2, %cst {dimension_numbers = #tpu.dot_dimension_numbers<[1], [0], [0], [1], [0, 0, 1, 1], [], []>} : vector<32x8xf32>, vector<8x8xf32>, vector<32x8xf32> -> vector<32x8xf32>
    %12 = vector.broadcast %8 : vector<32x1xf32> to vector<32x8xf32>
    %13 = arith.addf %11, %12 : vector<32x8xf32>
    %14 = vector.extract_strided_slice %5 {offsets = [0, 8], sizes = [8, 8], strides = [1, 1]} : vector<8x24xf32> to vector<8x8xf32>
    %cst_15 = arith.constant dense<0.000000e+00> : vector<32x8xf32>
    %15 = tpu.matmul %6, %14, %cst_15 {dimension_numbers = #tpu.dot_dimension_numbers<[1], [0], [0], [1], [0, 0, 1, 1], [], []>} : vector<32x8xf32>, vector<8x8xf32>, vector<32x8xf32> -> vector<32x8xf32>
    %16 = arith.addf %15, %13 : vector<32x8xf32>
    %cst_16 = arith.constant 0.000000e+00 : f32
    %17 = vector.broadcast %cst_16 : f32 to vector<32x8xf32>
    %18 = arith.maximumf %16, %17 : vector<32x8xf32>
    %cst_17 = arith.constant dense<0.000000e+00> : vector<8x8xf32>
    %19 = tpu.matmul %9, %18, %cst_17 {dimension_numbers = #tpu.dot_dimension_numbers<[1], [0], [0], [1], [0, 0, 1, 1], [], []>} : vector<8x32xf32>, vector<32x8xf32>, vector<8x8xf32> -> vector<8x8xf32>
    %20 = vector.extract_strided_slice %19 {offsets = [0, 0], sizes = [1, 8], strides = [1, 1]} : vector<8x8xf32> to vector<1x8xf32>
    %21 = vector.extract_strided_slice %5 {offsets = [0, 9], sizes = [8, 8], strides = [1, 1]} : vector<8x24xf32> to vector<8x8xf32>
    %cst_18 = arith.constant dense<0.000000e+00> : vector<32x8xf32>
    %22 = tpu.matmul %6, %21, %cst_18 {dimension_numbers = #tpu.dot_dimension_numbers<[1], [0], [0], [1], [0, 0, 1, 1], [], []>} : vector<32x8xf32>, vector<8x8xf32>, vector<32x8xf32> -> vector<32x8xf32>
    %23 = arith.addf %22, %13 : vector<32x8xf32>
    %cst_19 = arith.constant 0.000000e+00 : f32
    %24 = vector.broadcast %cst_19 : f32 to vector<32x8xf32>
    %25 = arith.maximumf %23, %24 : vector<32x8xf32>
    %cst_20 = arith.constant dense<0.000000e+00> : vector<8x8xf32>
    %26 = tpu.matmul %9, %25, %cst_20 {dimension_numbers = #tpu.dot_dimension_numbers<[1], [0], [0], [1], [0, 0, 1, 1], [], []>} : vector<8x32xf32>, vector<32x8xf32>, vector<8x8xf32> -> vector<8x8xf32>
    %27 = vector.extract_strided_slice %26 {offsets = [0, 0], sizes = [1, 8], strides = [1, 1]} : vector<8x8xf32> to vector<1x8xf32>
    %28 = arith.maximumf %20, %27 : vector<1x8xf32>
    %29 = arith.subf %20, %28 : vector<1x8xf32>
    %30 = math.exp %29 : vector<1x8xf32>
    %31 = arith.subf %27, %28 : vector<1x8xf32>
    %32 = math.exp %31 : vector<1x8xf32>
    %33 = arith.addf %30, %32 : vector<1x8xf32>
    %34 = math.log %33 : vector<1x8xf32>
    %35 = arith.addf %28, %34 : vector<1x8xf32>
    %36 = vector.broadcast %10 : f32 to vector<1x8xf32>
    %37 = arith.addf %35, %36 : vector<1x8xf32>
    %38 = vector.extract_strided_slice %5 {offsets = [0, 6], sizes = [8, 8], strides = [1, 1]} : vector<8x24xf32> to vector<8x8xf32>
    %cst_21 = arith.constant dense<0.000000e+00> : vector<32x8xf32>
    %39 = tpu.matmul %6, %38, %cst_21 {dimension_numbers = #tpu.dot_dimension_numbers<[1], [0], [0], [1], [0, 0, 1, 1], [], []>} : vector<32x8xf32>, vector<8x8xf32>, vector<32x8xf32> -> vector<32x8xf32>
    %40 = arith.addf %39, %13 : vector<32x8xf32>
    %cst_22 = arith.constant 0.000000e+00 : f32
    %41 = vector.broadcast %cst_22 : f32 to vector<32x8xf32>
    %42 = arith.maximumf %40, %41 : vector<32x8xf32>
    %cst_23 = arith.constant dense<0.000000e+00> : vector<8x8xf32>
    %43 = tpu.matmul %9, %42, %cst_23 {dimension_numbers = #tpu.dot_dimension_numbers<[1], [0], [0], [1], [0, 0, 1, 1], [], []>} : vector<8x32xf32>, vector<32x8xf32>, vector<8x8xf32> -> vector<8x8xf32>
    %44 = vector.extract_strided_slice %43 {offsets = [0, 0], sizes = [1, 8], strides = [1, 1]} : vector<8x8xf32> to vector<1x8xf32>
    %45 = vector.extract_strided_slice %5 {offsets = [0, 7], sizes = [8, 8], strides = [1, 1]} : vector<8x24xf32> to vector<8x8xf32>
    %cst_24 = arith.constant dense<0.000000e+00> : vector<32x8xf32>
    %46 = tpu.matmul %6, %45, %cst_24 {dimension_numbers = #tpu.dot_dimension_numbers<[1], [0], [0], [1], [0, 0, 1, 1], [], []>} : vector<32x8xf32>, vector<8x8xf32>, vector<32x8xf32> -> vector<32x8xf32>
    %47 = arith.addf %46, %13 : vector<32x8xf32>
    %cst_25 = arith.constant 0.000000e+00 : f32
    %48 = vector.broadcast %cst_25 : f32 to vector<32x8xf32>
    %49 = arith.maximumf %47, %48 : vector<32x8xf32>
    %cst_26 = arith.constant dense<0.000000e+00> : vector<8x8xf32>
    %50 = tpu.matmul %9, %49, %cst_26 {dimension_numbers = #tpu.dot_dimension_numbers<[1], [0], [0], [1], [0, 0, 1, 1], [], []>} : vector<8x32xf32>, vector<32x8xf32>, vector<8x8xf32> -> vector<8x8xf32>
    %51 = vector.extract_strided_slice %50 {offsets = [0, 0], sizes = [1, 8], strides = [1, 1]} : vector<8x8xf32> to vector<1x8xf32>
    %52 = arith.maximumf %44, %51 : vector<1x8xf32>
    %53 = arith.subf %44, %52 : vector<1x8xf32>
    %54 = math.exp %53 : vector<1x8xf32>
    %55 = arith.subf %51, %52 : vector<1x8xf32>
    %56 = math.exp %55 : vector<1x8xf32>
    %57 = arith.addf %54, %56 : vector<1x8xf32>
    %58 = math.log %57 : vector<1x8xf32>
    %59 = arith.addf %52, %58 : vector<1x8xf32>
    %60 = vector.broadcast %10 : f32 to vector<1x8xf32>
    %61 = arith.addf %59, %60 : vector<1x8xf32>
    %cst_27 = arith.constant 0.000000e+00 : f32
    %62 = vector.broadcast %cst_27 : f32 to vector<1x8xf32>
    %63 = arith.subf %62, %37 : vector<1x8xf32>
    %cst_28 = arith.constant 0.000000e+00 : f32
    %64 = vector.broadcast %cst_28 : f32 to vector<1x8xf32>
    %65 = arith.maximumf %63, %64 : vector<1x8xf32>
    %66 = math.absf %63 : vector<1x8xf32>
    %cst_29 = arith.constant 0.000000e+00 : f32
    %67 = vector.broadcast %cst_29 : f32 to vector<1x8xf32>
    %68 = arith.subf %67, %66 : vector<1x8xf32>
    %69 = math.exp %68 : vector<1x8xf32>
    %70 = math.log1p %69 : vector<1x8xf32>
    %71 = arith.addf %65, %70 : vector<1x8xf32>
    %cst_30 = arith.constant dense<0.000000e+00> : vector<1xf32>
    %72 = vector.multi_reduction <add>, %71, %cst_30 [1] : vector<1x8xf32> to vector<1xf32>
    %73 = vector.shape_cast %72 : vector<1xf32> to vector<1x1xf32>
    %cst_31 = arith.constant 0.000000e+00 : f32
    %74 = vector.broadcast %cst_31 : f32 to vector<1x8xf32>
    %75 = arith.maximumf %61, %74 : vector<1x8xf32>
    %76 = math.absf %61 : vector<1x8xf32>
    %cst_32 = arith.constant 0.000000e+00 : f32
    %77 = vector.broadcast %cst_32 : f32 to vector<1x8xf32>
    %78 = arith.subf %77, %76 : vector<1x8xf32>
    %79 = math.exp %78 : vector<1x8xf32>
    %80 = math.log1p %79 : vector<1x8xf32>
    %81 = arith.addf %75, %80 : vector<1x8xf32>
    %cst_33 = arith.constant dense<0.000000e+00> : vector<1xf32>
    %82 = vector.multi_reduction <add>, %81, %cst_33 [1] : vector<1x8xf32> to vector<1xf32>
    %83 = vector.shape_cast %82 : vector<1xf32> to vector<1x1xf32>
    %84 = tpu.concatenate %73, %83 in 1 : vector<1x1xf32>, vector<1x1xf32> -> vector<1x2xf32>
    %85 = vector.shape_cast %84 : vector<1x2xf32> to vector<1x1x2xf32>
    %c0_34 = arith.constant 0 : index
    %c0_35 = arith.constant 0 : index
    %c0_36 = arith.constant 0 : index
    %86 = vector.load %arg9[%c0_34, %c0_35, %c0_36] : memref<1x1x2xf32, #tpu.memory_space<vmem>>, vector<1x1x2xf32>
    tpu.vector_store %arg9[%c0_34, %c0_35, %c0_36], %85 {strides = array<i32>} : memref<1x1x2xf32, #tpu.memory_space<vmem>>, vector<1x1x2xf32>,
    return
  }
  func.func @transform_0(%arg0: i32) -> (i32, i32) {
    %c0_i32 = arith.constant 0 : i32
    %c0_i32_0 = arith.constant 0 : i32
    %c0_i32_1 = arith.constant 0 : i32
    return %c0_i32, %c0_i32_0 : i32, i32
  }
  func.func @transform_1(%arg0: i32) -> (i32, i32) {
    %c0_i32 = arith.constant 0 : i32
    %c0_i32_0 = arith.constant 0 : i32
    return %c0_i32, %arg0 : i32, i32
  }
  func.func @transform_2(%arg0: i32) -> (i32, i32) {
    %c0_i32 = arith.constant 0 : i32
    %c0_i32_0 = arith.constant 0 : i32
    %c0_i32_1 = arith.constant 0 : i32
    return %c0_i32, %c0_i32_0 : i32, i32
  }
  func.func @transform_3(%arg0: i32) -> (i32, i32) {
    %c0_i32 = arith.constant 0 : i32
    %c0_i32_0 = arith.constant 0 : i32
    %c0_i32_1 = arith.constant 0 : i32
    return %c0_i32, %c0_i32_0 : i32, i32
  }
  func.func @transform_4(%arg0: i32) -> (i32, i32) {
    %c0_i32 = arith.constant 0 : i32
    %c0_i32_0 = arith.constant 0 : i32
    %c0_i32_1 = arith.constant 0 : i32
    return %c0_i32, %c0_i32_0 : i32, i32
  }
  func.func @transform_5(%arg0: i32) -> (i32, i32) {
    %c0_i32 = arith.constant 0 : i32
    %c0_i32_0 = arith.constant 0 : i32
    %c0_i32_1 = arith.constant 0 : i32
    return %c0_i32, %c0_i32_0 : i32, i32
  }
  func.func @transform_6(%arg0: i32) -> (i32, i32) {
    %c0_i32 = arith.constant 0 : i32
    %c0_i32_0 = arith.constant 0 : i32
    %c0_i32_1 = arith.constant 0 : i32
    return %c0_i32, %c0_i32_0 : i32, i32
  }
  func.func @transform_7(%arg0: i32) -> (i32, i32) {
    %c0_i32 = arith.constant 0 : i32
    %c0_i32_0 = arith.constant 0 : i32
    %c0_i32_1 = arith.constant 0 : i32
    return %c0_i32, %c0_i32_0 : i32, i32
  }
  func.func @transform_8(%arg0: i32) -> (i32, i32, i32) {
    %c0_i32 = arith.constant 0 : i32
    %c0_i32_0 = arith.constant 0 : i32
    %c0_i32_1 = arith.constant 0 : i32
    return %arg0, %c0_i32, %c0_i32_0 : i32, i32, i32
  }
}

</mosaic_0001>

<bundles_post_ra>
// kernel: tpu_custom_call.1
= control target key start
LH: loop header
LB: loop body
LE: loop exit
PB: predicated region body
PF: predicated region fallthrough
CT: control target
= control target key end

     0   :  { %s1158_s29 = smov 8   ;;  %vm43_vm0 = vcmask 64512   ;;  %s1345_s0 = inlined_call_operand.vmem [shape: f32[16,8], index: 0, kind: input, shape index: {}]   ;;  %s1346_s1 = inlined_call_operand.vmem [shape: f32[16,8], index: 1, kind: input, shape index: {}]   ;;  %s1347_s2 = inlined_call_operand.vmem [shape: f32[16,8], index: 2, kind: input, shape index: {}]   ;;  %s1348_s3 = inlined_call_operand.vmem [shape: f32[32,8], index: 3, kind: input, shape index: {}]   ;;  %s1349_s4 = inlined_call_operand.vmem [shape: f32[32,8], index: 4, kind: input, shape index: {}]   ;;  %s1350_s5 = inlined_call_operand.vmem [shape: f32[32,1], index: 5, kind: input, shape index: {}]   ;;  %s1351_s6 = inlined_call_operand.vmem [shape: f32[8,32], index: 6, kind: input, shape index: {}]   ;;  %s1352_s7 = inlined_call_operand.<no memory space> [shape: f32[1,1], index: 7, kind: input, shape index: {}]   ;;  %s1353_s8 = inlined_call_operand.hbm [shape: f32[1,1,2], index: 8, kind: output, shape index: {}]  }
   0x1   :  { %v31_v0 = vld [vmem:[%s1346_s1] sm:$0xff]  ;;  %v32_v1 = vld [vmem:[%s1346_s1 + $0x8] sm:$0xff] }
   0x2   :  { %36 = vrot.lane.b32.xlu0 %v31_v0, %s1158_s29  ;;  %v51_v2 = vld [vmem:[%s1349_s4] sm:$0xff]  ;;  %v52_v3 = vld [vmem:[%s1349_s4 + $0x8] sm:$0xff]  ;;  %993 = vmatprep.subr.mxu0 %v32_v1 }
   0x3   :  { %v34_v4 = vld [vmem:[%s1347_s2] sm:$0xff]  ;;  %995 = vmatprep.mubr.msk.f32.mxu0 %vm43_vm0, %v51_v2 }
   0x4   :  { %14 = vsyncpa [#allocation4], 0  ;;  %994 = vmatpush3.msra.mxu0 %v32_v1  ;;  %s1159_s1 = smov 16   ;;  %v53_v5 = vld [vmem:[%s1349_s4 + $0x10] sm:$0xff]  ;;  %v54_v6 = vld [vmem:[%s1349_s4 + $0x18] sm:$0xff]  ;;  %vm45_vm1 = vcmask 130048  }
   0x5   :  { %996 = vmatmul.mubr.msk.f32.vlgmr.msra.gmra.mrb[0].mxu0 %vm43_vm0, %v52_v3  ;;  %v47_v7 = vld [vmem:[%s1348_s3] sm:$0xff]  ;;  %s1160_s23 = smov 122   ;;  %s1161_s4 = smov 120   ;;  %v56_v14 = vld [vmem:[%s1350_s5 + $0x8] sm:$0xff]  ;;  %v1164_v15 = vmov 0   ;;  %v58_v16 = vld [vmem:[%s1350_s5 + $0x18] sm:$0xff] }
   0x6   :  { %40 = vrot.lane.b32.xlu0 %v34_v4, %s1159_s1  ;;  %998 = vmatprep.mubr.msk.f32.mxu0 %vm43_vm0, %v53_v5  ;;  %v33_v9 = vld [vmem:[%s1345_s0] sm:$0xff]  ;;  %s1162_s24 = smov 119   ;;  %s1163_s25 = smov 121   ;;  %v57_v17 = vld [vmem:[%s1350_s5 + $0x10] sm:$0xff]  ;;  %v48_v21 = vld [vmem:[%s1348_s3 + $0x8] sm:$0xff]  ;;  %v1165_v29 = vmov 0.0|0.0  }
   0x7   :  { %1003 = vmatprep.mubr.msk.f32.mxu1 %vm43_vm0, %v47_v7  ;;  %v55_v13 = vld [vmem:[%s1350_s5] sm:$0xff]  ;;  %1113 = vset.pattern.permute.xlu1 %v1164_v15  ;;  %v49_v22 = vld [vmem:[%s1348_s3 + $0x10] sm:$0xff]  ;;  %v50_v24 = vld [vmem:[%s1348_s3 + $0x18] sm:$0xff]  ;;  %vm1166_vm2 = vmmov 0   ;;  %v1167_v30 = vmov 0.0   ;;  %vm283_vm3 = vcmask 261120  }
   0x8   :  { %1112 = vset.pattern.permute.xlu0 %v1164_v15  ;;  %1077 = vmatprep.subr.bf16.mxu0 %v1165_v29  ;;  %v59_v60 = vld [vmem:[%s1351_s6] sm:$0xff]  ;;  %vm884_vm5 = vcmask 57344   ;;  %vm906_vm7 = vcmask 7168   ;;  %vm908_vm8 = vcmask 8192  }
   0x9   :  { %999 = vmatmul.mubr.msk.f32.gmra.mrb[2].mxu0 %vm43_vm0, %v54_v6 }
   0xa   :  { %1017 = vmatprep.mubr.msk.f32.mxu0 %vm1166_vm2, %v1167_v30 }
  0x74   :  { %v37_v8 = vpop.permute.xlu0 %36 }
  0x75   :  { %v44_v10 = vsel %vm43_vm0, %v33_v9, %v37_v8 }
  0x78   :  { %v41_v11 = vpop.permute.xlu0 %40 }
  0x79   :  { %v46_v12 = vsel %vm45_vm1, %v44_v10, %v41_v11 }
  0x7a   :  { %532 = vrot.lane.b32.xlu0 %v46_v12, %s1160_s23  ;;  %179 = vrot.lane.b32.xlu1 %v46_v12, %s1161_s4 }
  0x7e   :  { %357 = vrot.lane.b32.xlu1 %v46_v12, %s1162_s24  ;;  %63 = vperm.xlu0 %1112, %v55_v13  }
  0x82   :  { %694 = vrot.lane.b32.xlu1 %v46_v12, %s1163_s25  ;;  %78 = vperm.xlu0 %1112, %v58_v16  }
  0x86   :  { %68 = vperm.xlu1 %1113, %v56_v14  }
  0x8a   :  { %73 = vperm.xlu1 %1113, %v57_v17  }
  0xd8   :  { %v997_v18 = vpop.f32.mrb[0].mxu0 }
  0xd9   :  { %v159_v19 = vpop.f32.mrb[1].mxu0 }
  0xdc   :  { %v1000_v27 = vpop.f32.mrb[2].mxu0 }
  0xdd   :  { %v169_v28 = vpop.f32.mrb[3].mxu0 }
  0xec   :  { %v180_v20 = vpop.permute.xlu1 %179  ;;  %v533_v25 = vpop.permute.xlu0 %532 }
  0xed   :  { %1001 = vmatprep.subr.mxu1 %v180_v20 }
  0xee   :  { %1002 = vmatpush3.msra.mxu1 %v180_v20 }
  0xef   :  { %1004 = vmatmul.mubr.msk.f32.vlgmr.msra.gmra.mrb[0].mxu1 %vm43_vm0, %v48_v21 }
  0xf0   :  { %v358_v23 = vpop.permute.xlu1 %357  ;;  %1006 = vmatprep.mubr.msk.f32.mxu1 %vm43_vm0, %v49_v22 }
  0xf1   :  { %1020 = vmatprep.subr.mxu1 %v358_v23 }
  0xf2   :  { %1021 = vmatpush3.msra.mxu1 %v358_v23 }
  0xf3   :  { %1007 = vmatmul.mubr.msk.f32.gmra.mrb[2].mxu1 %vm43_vm0, %v50_v24  ;;  %1039 = vmatprep.subr.mxu1 %v533_v25 }
  0xf4   :  { %1022 = vmatprep.mubr.msk.f32.mxu1 %vm43_vm0, %v47_v7  ;;  %v695_v26 = vpop.permute.xlu1 %694 }
  0xf7   :  { %1023 = vmatmul.mubr.msk.f32.vlgmr.msra.gmra.mrb[4].mxu1 %vm43_vm0, %v48_v21 }
  0xf8   :  { %1040 = vmatpush3.msra.mxu1 %v533_v25  ;;  %1025 = vmatprep.mubr.msk.f32.mxu1 %vm43_vm0, %v49_v22 }
  0xf9   :  { %1058 = vmatprep.subr.mxu1 %v695_v26 }
  0xfb   :  { %1026 = vmatmul.mubr.msk.f32.gmra.mrb[6].mxu1 %vm43_vm0, %v50_v24 }
  0xfc   :  { %1041 = vmatprep.mubr.msk.f32.mxu1 %vm43_vm0, %v47_v7 }
  0xfd   :  { %v64_v31 = vpop.permute.xlu0 %63 }
  0xfe   :  { %v1288_v34 = vadd.f32 %v159_v19, %v64_v31 }
  0xff   :  { %1042 = vmatmul.mubr.msk.f32.vlgmr.msra.gmra.mrb[8].mxu1 %vm43_vm0, %v48_v21 }
 0x100   :  { %1059 = vmatpush3.msra.mxu1 %v695_v26  ;;  %1044 = vmatprep.mubr.msk.f32.mxu1 %vm43_vm0, %v49_v22 }
 0x101   :  { %v79_v36 = vpop.permute.xlu0 %78 }
 0x102   :  { %v1292_v42 = vadd.f32 %v1000_v27, %v79_v36 }
 0x103   :  { %1045 = vmatmul.mubr.msk.f32.gmra.mrb[10].mxu1 %vm43_vm0, %v50_v24 }
 0x104   :  { %1060 = vmatprep.mubr.msk.f32.mxu1 %vm43_vm0, %v47_v7 }
 0x105   :  { %v69_v32 = vpop.permute.xlu1 %68 }
 0x106   :  { %v1286_v33 = vadd.f32 %v997_v18, %v69_v32 }
 0x107   :  { %1061 = vmatmul.mubr.msk.f32.vlgmr.msra.gmra.mrb[12].mxu1 %vm43_vm0, %v48_v21 }
 0x108   :  { %1063 = vmatprep.mubr.msk.f32.mxu1 %vm43_vm0, %v49_v22 }
 0x109   :  { %v74_v39 = vpop.permute.xlu1 %73 }
 0x10a   :  { %v1294_v44 = vadd.f32 %v169_v28, %v74_v39 }
 0x10b   :  { %1064 = vmatmul.mubr.msk.f32.gmra.mrb[14].mxu1 %vm43_vm0, %v50_v24 }
 0x1c2   :  { %v1005_v35 = vpop.f32.mrb[0].mxu1 }
 0x1c3   :  { %v266_v37 = vadd.f32 %v1005_v35, %v1286_v33  ;;  %v260_v38 = vpop.f32.mrb[1].mxu1 }
 0x1c4   :  { %v261_v40 = vadd.f32 %v260_v38, %v1288_v34 }
 0x1c5   :  { %v280_v41 = vmax.f32 %v266_v37, 0.0 }
 0x1c6   :  { %v279_v43 = vmax.f32 %v261_v40, 0.0  ;;  %v1008_v45 = vpop.f32.mrb[2].mxu1 }
 0x1c7   :  { %v276_v46 = vadd.f32 %v1008_v45, %v1292_v42  ;;  %v270_v47 = vpop.f32.mrb[3].mxu1 }
 0x1c8   :  { %v1078_v48 = vpack.c.bf16 %v280_v41, %v279_v43  ;;  %v271_v49 = vadd.f32 %v270_v47, %v1294_v44 }
 0x1c9   :  { %v282_v50 = vmax.f32 %v276_v46, 0.0 }
 0x1ca   :  { %v281_v51 = vmax.f32 %v271_v49, 0.0  ;;  %1079 = vmatpush3.bf16.msra.mxu0 %v1078_v48  ;;  %v1024_v52 = vpop.f32.mrb[4].mxu1 }
 0x1cb   :  { %v432_v53 = vadd.f32 %v1024_v52, %v1286_v33  ;;  %v426_v54 = vpop.f32.mrb[5].mxu1  ;;  %1080 = vmatprep.subr.bf16.mxu0 %v1165_v29 }
 0x1cc   :  { %v1081_v55 = vpack.c.bf16 %v282_v50, %v281_v51  ;;  %v427_v56 = vadd.f32 %v426_v54, %v1288_v34 }
 0x1cd   :  { %v446_v57 = vmax.f32 %v432_v53, 0.0 }
 0x1ce   :  { %v445_v58 = vmax.f32 %v427_v56, 0.0  ;;  %1082 = vmatpush3.bf16.msra.mxu0 %v1081_v55  ;;  %v1027_v59 = vpop.f32.mrb[6].mxu1  ;;  %v530_v56 = vstv %s1352_s7  ;;  %s1168_s7 = smov [#allocation3]  }
 0x1cf   :  { %v442_v61 = vadd.f32 %v1027_v59, %v1292_v42  ;;  %v436_v62 = vpop.f32.mrb[7].mxu1  ;;  %1083 = vmatprep.subr.bf16.mxu0 %v1165_v29  ;;  %s916_s17 = sshll.u32 %s1168_s7, 4  ;;  %s917_s17 = int_to_ptr.vmem [resolvable:$true] %s916_s17 }
 0x1d0   :  { %v1084_v63 = vpack.c.bf16 %v446_v57, %v445_v58  ;;  %v437_v0 = vadd.f32 %v436_v62, %v1294_v44  ;;  %s1134_s18 = scalar_lea.vmem %s917_s17, 16  ;;  %s1138_s19 = scalar_lea.vmem %s917_s17, 32 }
 0x1d1   :  { %v448_v1 = vmax.f32 %v442_v61, 0.0  ;;  %1018 = vmatmul.mubr.msk.f32.vlgmr.msra.gmra.mrb[4].mxu0 %vm283_vm3, %v59_v60  ;;  %p1135_p0 = scmp.ne.s32.totalorder %s917_s17, %s1134_s18  ;;  %p1139_p1 = scmp.lt.s32.totalorder %s917_s17, %s917_s17 }
 0x1d2   :  { %v447_v2 = vmax.f32 %v437_v0, 0.0  ;;  %1085 = vmatpush3.bf16.msra.mxu0 %v1084_v63  ;;  %v1043_v3 = vpop.f32.mrb[8].mxu1  ;;  %1036 = vmatprep.mubr.msk.f32.mxu0 %vm1166_vm2, %v1167_v30  ;;  %p1140_p2 = scmp.lt.s32.totalorder %s1138_s19, %s1134_s18 }
 0x1d3   :  { %v607_v4 = vadd.f32 %v1043_v3, %v1286_v33  ;;  %v601_v5 = vpop.f32.mrb[9].mxu1  ;;  %1086 = vmatprep.subr.bf16.mxu0 %v1165_v29 }
 0x1d4   :  { %v1087_v6 = vpack.c.bf16 %v448_v1, %v447_v2  ;;  %v602_v7 = vadd.f32 %v601_v5, %v1288_v34  ;;  %p1141_p3 = por %p1140_p2, %p1139_p1 }
 0x1d5   :  { %v621_v8 = vmax.f32 %v607_v4, 0.0 }
 0x1d6   :  { %v620_v9 = vmax.f32 %v602_v7, 0.0  ;;  %1088 = vmatpush3.bf16.msra.mxu0 %v1087_v6  ;;  %v1046_v10 = vpop.f32.mrb[10].mxu1  ;;  %p1142_p4 = pnand %p1141_p3, %p1135_p0 }
 0x1d7   :  { %v617_v11 = vadd.f32 %v1046_v10, %v1292_v42  ;;  %v611_v12 = vpop.f32.mrb[11].mxu1  ;;  %1089 = vmatprep.subr.bf16.mxu0 %v1165_v29 }
 0x1d8   :  { %v1090_v13 = vpack.c.bf16 %v621_v8, %v620_v9  ;;  %v612_v14 = vadd.f32 %v611_v12, %v1294_v44 }
 0x1d9   :  { %v623_v15 = vmax.f32 %v617_v11, 0.0  ;;  %1037 = vmatmul.mubr.msk.f32.vlgmr.msra.gmra.mrb[6].mxu0 %vm283_vm3, %v59_v60 }
 0x1da   :  { %v622_v16 = vmax.f32 %v612_v14, 0.0  ;;  %1091 = vmatpush3.bf16.msra.mxu0 %v1090_v13  ;;  %v1062_v17 = vpop.f32.mrb[12].mxu1  ;;  %1055 = vmatprep.mubr.msk.f32.mxu0 %vm1166_vm2, %v1167_v30 }
 0x1db   :  { %v769_v18 = vadd.f32 %v1062_v17, %v1286_v33  ;;  %v763_v19 = vpop.f32.mrb[13].mxu1  ;;  %1092 = vmatprep.subr.bf16.mxu0 %v1165_v29 }
 0x1dc   :  { %v1093_v20 = vpack.c.bf16 %v623_v15, %v622_v16  ;;  %v764_v21 = vadd.f32 %v763_v19, %v1288_v34 }
 0x1dd   :  { %v783_v22 = vmax.f32 %v769_v18, 0.0 }
 0x1de   :  { %v782_v23 = vmax.f32 %v764_v21, 0.0  ;;  %1094 = vmatpush3.bf16.msra.mxu0 %v1093_v20  ;;  %v1065_v24 = vpop.f32.mrb[14].mxu1 }
 0x1df   :  { %v779_v25 = vadd.f32 %v1065_v24, %v1292_v42  ;;  %v773_v26 = vpop.f32.mrb[15].mxu1  ;;  %1095 = vmatprep.subr.bf16.mxu0 %v1165_v29 }
 0x1e0   :  { %v1096_v27 = vpack.c.bf16 %v783_v22, %v782_v23  ;;  %v774_v28 = vadd.f32 %v773_v26, %v1294_v44 }
 0x1e1   :  { %v785_v31 = vmax.f32 %v779_v25, 0.0  ;;  %1056 = vmatmul.mubr.msk.f32.vlgmr.msra.gmra.mrb[8].mxu0 %vm283_vm3, %v59_v60 }
 0x1e2   :  { %v784_v32 = vmax.f32 %v774_v28, 0.0  ;;  %1097 = vmatpush3.bf16.msra.mxu0 %v1096_v27  ;;  %1074 = vmatprep.mubr.msk.f32.mxu0 %vm1166_vm2, %v1167_v30 }
 0x1e3   :  { %1098 = vmatprep.subr.bf16.mxu0 %v1165_v29 }
 0x1e4   :  { %v1099_v33 = vpack.c.bf16 %v785_v31, %v784_v32 }
 0x1e6   :  { %1100 = vmatpush3.bf16.msra.mxu0 %v1099_v33 }
 0x1e9   :  { %1075 = vmatmul.mubr.msk.f32.vlgmr.msra.gmra.mrb[10].mxu0 %vm283_vm3, %v59_v60 }
 0x2a4   :  { %v353_v34 = vpop.f32.mrb[4].mxu0 }
 0x2a5   :  { %v1019_v35 = vpop.f32.mrb[5].mxu0 }
 0x2ac   :  { %v515_v36 = vpop.f32.mrb[6].mxu0 }
 0x2ad   :  { %v519_v37 = vmax.f32 %v353_v34, %v515_v36  ;;  %v1038_v38 = vpop.f32.mrb[7].mxu0 }
 0x2af   :  { %v520_v39 = vsub.f32 %v353_v34, %v519_v37  ;;  %v523_v40 = vsub.f32 %v515_v36, %v519_v37 }
 0x2b1   :  { %v521_v41 = vmul.f32 1.442695, %v520_v39  ;;  %v524_v42 = vmul.f32 1.442695, %v523_v40 }
 0x2b3   :  { %1114 = vpow2.f32 %v521_v41 }
 0x2b4   :  { %1116 = vpow2.f32 %v524_v42  ;;  %v690_v43 = vpop.f32.mrb[8].mxu0 }
 0x2b5   :  { %v1057_v44 = vpop.f32.mrb[9].mxu0 }
 0x2bc   :  { %v852_v30 = vpop.f32.mrb[10].mxu0 }
 0x2bd   :  { %v1115_v45 = vpop.eup %1114  ;;  %v856_v29 = vmax.f32 %v690_v43, %v852_v30  ;;  %v1076_v46 = vpop.f32.mrb[11].mxu0 }
 0x2be   :  { %v1117_v47 = vpop.eup %1116 }
 0x2bf   :  { %v526_v48 = vadd.f32 %v1117_v47, %v1115_v45  ;;  %v857_v49 = vsub.f32 %v690_v43, %v856_v29  ;;  %v860_v50 = vsub.f32 %v852_v30, %v856_v29 }
 0x2c1   :  { %1118 = vlog2.f32 %v526_v48  ;;  %v858_v51 = vmul.f32 1.442695, %v857_v49  ;;  %v861_v52 = vmul.f32 1.442695, %v860_v50 }
 0x2c3   :  { %1120 = vpow2.f32 %v858_v51 }
 0x2c4   :  { %1122 = vpow2.f32 %v861_v52 }
 0x2cb   :  { %v1119_v53 = vpop.eup %1118 }
 0x2cc   :  { %v528_v54 = vmul.f32 0.6931472, %v1119_v53 }
 0x2cd   :  { %v1121_v55 = vpop.eup %1120 }
 0x2ce   :  { %v1123_v57 = vpop.eup %1122  ;;  %v529_v58 = vadd.f32 %v528_v54, %v519_v37 }
 0x2cf   :  { %v863_v59 = vadd.f32 %v1123_v57, %v1121_v55 }
 0x2d0   :  { %v531_v60 = vadd.f32 %v530_v56, %v529_v58 }
 0x2d1   :  { %1124 = vlog2.f32 %v863_v59 }
 0x2d2   :  { %v868_v61 = vsub.f32 0.0, %v531_v60 }
 0x2d4   :  { %v870_v62 = vand.u32 2147483647, %v868_v61  ;;  %v869_v17 = vmax.f32 %v868_v61, 0.0 }
 0x2d6   :  { %v871_v63 = vsub.f32 0.0, %v870_v62 }
 0x2d8   :  { %v872_v0 = vmul.f32 1.442695, %v871_v63 }
 0x2da   :  { %1126 = vpow2.f32 %v872_v0 }
 0x2db   :  { %v1125_v1 = vpop.eup %1124 }
 0x2dc   :  { %v865_v2 = vmul.f32 0.6931472, %v1125_v1 }
 0x2de   :  { %v866_v3 = vadd.f32 %v865_v2, %v856_v29 }
 0x2e0   :  { %v867_v4 = vadd.f32 %v866_v3, %v530_v56 }
 0x2e2   :  { %v889_v5 = vand.u32 2147483647, %v867_v4  ;;  %v888_v28 = vmax.f32 %v867_v4, 0.0 }
 0x2e4   :  { %v1127_v6 = vpop.eup %1126  ;;  %v890_v7 = vsub.f32 0.0, %v889_v5 }
 0x2e5   :  { %v874_v8 = vadd.f32 1.0, %v1127_v6  ;;  %v877_v10 = vmul.f32 -0.5, %v1127_v6  ;;  %v880_v12 = vand.u32 2147483647, %v1127_v6 }
 0x2e6   :  { %v891_v9 = vmul.f32 1.442695, %v890_v7 }
 0x2e7   :  { %1128 = vlog2.f32 %v874_v8  ;;  %v878_v11 = vadd.f32 1.0, %v877_v10  ;;  %vm881_vm4 = vcmp.lt.f32.partialorder %v880_v12, 0.0004427343 }
 0x2e8   :  { %1130 = vpow2.f32 %v891_v9 }
 0x2e9   :  { %v879_v16 = vmul.f32 %v1127_v6, %v878_v11 }
 0x2f1   :  { %v1129_v13 = vpop.eup %1128 }
 0x2f2   :  { %v1131_v14 = vpop.eup %1130  ;;  %v876_v15 = vmul.f32 0.6931472, %v1129_v13 }
 0x2f3   :  { %v893_v18 = vadd.f32 1.0, %v1131_v14  ;;  %v896_v22 = vmul.f32 -0.5, %v1131_v14  ;;  %v899_v24 = vand.u32 2147483647, %v1131_v14 }
 0x2f4   :  { %v882_v19 = vsel %vm881_vm4, %v879_v16, %v876_v15 }
 0x2f5   :  { %v883_v20 = vadd.f32 %v882_v19, %v869_v17  ;;  %1132 = vlog2.f32 %v893_v18  ;;  %v897_v23 = vadd.f32 1.0, %v896_v22  ;;  %vm900_vm6 = vcmp.lt.f32.partialorder %v899_v24, 0.0004427343 }
 0x2f7   :  { %v885_v21 = vsel %vm884_vm5, %v883_v20, 0.0  ;;  %v898_v27 = vmul.f32 %v1131_v14, %v897_v23 }
 0x2f8   :  { %886 = vadd.xlane.f32.xlu1 %v885_v21 }
 0x2ff   :  { %v1133_v25 = vpop.eup %1132 }
 0x300   :  { %v895_v26 = vmul.f32 0.6931472, %v1133_v25 }
 0x302   :  { %v901_v31 = vsel %vm900_vm6, %v898_v27, %v895_v26 }
 0x303   :  { %v902_v32 = vadd.f32 %v901_v31, %v888_v28 }
 0x305   :  { %v903_v33 = vsel %vm884_vm5, %v902_v32, 0.0 }
 0x306   :  { %904 = vadd.xlane.f32.xlu0 %v903_v33 }
 0x385   :  { %v887_v34 = vpop.xlane.xlu1 %886 }
 0x393   :  { %v905_v35 = vpop.xlane.xlu0 %904 }
 0x394   :  { %v907_v36 = vsel %vm906_vm7, %v887_v34, %v905_v35 }
 0x395   :  { %909 = vst.msk [vmem:[#allocation3] sm:$0x1] %vm908_vm8, %v907_v36 }
 0x396   :  { %1145 = shalt.err (!%p1142_p4)
}
 0x397   :  { %s1146_s21 = scalar_lea.hbm %s1353_s8, 16 }
 0x398   :  { %p1147_p5 = scmp.ne.s32.totalorder %s1353_s8, %s1146_s21  ;;  %p1150_p6 = scmp.lt.u32.totalorder %s1146_s21, %s1353_s8 }
 0x39a   :  { %p1152_p7 = pnand %p1150_p6, %p1147_p5 }
 0x39c   :  { %1155 = shalt.err (!%p1152_p7)
}
 0x39d   :  { %919 = dma.vmem_to_hbm [thread:$0]  %s917_s17, 16, %s1353_s8, [#allocation4]  }
 0x39e   :  { %1156 = dma.done.wait [#allocation4], 16  }
 0x39f   :  { %1157 = vsyncadd [#allocation4], 4294967280 }
 0x3a0   :  { %923 = vsyncpa [#allocation4], 1 }

</bundles_post_ra>
